<compile_context>
chip_gen: v6e
topology: v6e:2x2x1
jax: 0.10.0
libtpu: 0.0.40
codegen_flags: <defaults>
</compile_context>

<pallas_src>
import jax
import jax.numpy as jnp
from jax import lax
from jax.experimental import pallas as pl
from jax.experimental.pallas import tpu as pltpu

# ---------------------------------------------------------------------------
# Model hyperparameters (small, consistent with the module's forward pass).
# ---------------------------------------------------------------------------
B = 2              # batch
L = 16             # sequence length
H = 32             # hidden size (module default 768; small synthetic size here)
C_OUT = 128        # conv out_channels (fixed by the head architecture)
NUM_LABELS = 2
KERNEL_SIZES = (3, 4, 5)
# PyTorch padding='same' (stride=1): left = (k-1)//2, right = (k-1) - left
PADS = {3: (1, 1), 4: (1, 2), 5: (2, 2)}
PAD_MAX = 2                          # largest pad (k=5) -> a 5-tap window covers all convs
NUM_TAPS = 2 * PAD_MAX + 1           # 5
FEAT = len(KERNEL_SIZES) * C_OUT     # 384 = 3 * 128 (lane-dense)
OUT_PAD = 128                        # logits padded to a full lane-dense block
TARGET_M = 256                       # target Bb*L matmul rows (fills v6e/v7x 256-row MXU)


# ---------------------------------------------------------------------------
# Pallas kernel: one batch-block per grid step.
#   bf16 5-tap window -> 5 accumulated MXU matmuls -> bias+ReLU -> max over seq
#   -> one batched FC matmul -> one dense [Bb, 128] store.
# ---------------------------------------------------------------------------
def cnn_head_kernel(x_ref, w_ref, b_ref, fcw_ref, fcb_ref, out_ref):
    x = x_ref[...]                                        # [Bb, L, H] bf16 (no f32 cast)
    bb, seq_len, hidden = x.shape

    # Zero-padded sequence window, built in bf16 entirely in VMEM/vregs.
    zpad = jnp.zeros((bb, PAD_MAX, hidden), x.dtype)
    xp = jnp.concatenate([zpad, x, zpad], axis=1)         # [Bb, L + 4, H]

    # Conv for all three kernel sizes: 5 accumulated matmuls over shifted taps.
    # Tap j corresponds to x[t + j - PAD_MAX]; W_all packs each conv's taps into the
    # matching slot (zero rows elsewhere reproduce padding='same' at the boundaries).
    acc = jnp.zeros((bb * seq_len, FEAT), jnp.float32)
    for j in range(NUM_TAPS):                             # static unroll (5 taps)
        tap = xp[:, j:j + seq_len, :].reshape(bb * seq_len, hidden)   # bf16 [Bb*L, H]
        acc = acc + jnp.dot(tap, w_ref[j], preferred_element_type=jnp.float32)

    y = jnp.maximum(acc + b_ref[...], 0.0)                # bias + ReLU (f32 epilogue)
    feat = jnp.max(y.reshape(bb, seq_len, FEAT), axis=1)  # max-pool over seq -> [Bb, 384]

    # Final linear: one batched matmul, output padded to 128 lanes (sliced outside).
    logits = jnp.dot(feat.astype(jnp.bfloat16), fcw_ref[...],
                     preferred_element_type=jnp.float32) + fcb_ref[...]
    out_ref[...] = logits.astype(out_ref.dtype)           # [Bb, OUT_PAD]


# ---------------------------------------------------------------------------
# Wrapper: pack conv weights into W_all [5, H, 3*C_OUT], pad FC, call the kernel.
# ---------------------------------------------------------------------------
def _build_combined_conv_weights(params, hidden):
    """Pack the three convs' taps into W_all [5, H, 3*C_OUT] and bias [1, 3*C_OUT].

    Tap slot j holds the weight applied to x[t + j - PAD_MAX]; conv k with left pad lp
    places its tap m into slot j = m - lp + PAD_MAX. Unused slots stay zero, which also
    reproduces PyTorch padding='same' zero-padding at the sequence boundaries.
    """
    w_all = jnp.zeros((NUM_TAPS, hidden, FEAT), jnp.float32)
    biases = []
    for c, ((w, b), k) in enumerate(zip(params["convs"], KERNEL_SIZES)):
        lp = PADS[k][0]
        col = c * C_OUT
        for m in range(k):
            j = m - lp + PAD_MAX
            w_all = w_all.at[j, :, col:col + C_OUT].set(w[m])
        biases.append(b)
    return w_all, jnp.concatenate(biases, axis=-1)


def cnn_head_forward(x, params):
    """x: [B, L, H] hidden states (bert(...).last_hidden_state). Returns logits [B, NUM_LABELS]."""
    batch, seq_len, hidden = x.shape
    w_all, b_all = _build_combined_conv_weights(params, hidden)
    fcw, fcb = params["fc"]
    fcw_pad = jnp.zeros((FEAT, OUT_PAD), jnp.float32).at[:, :NUM_LABELS].set(fcw)
    fcb_pad = jnp.zeros((1, OUT_PAD), jnp.float32).at[:, :NUM_LABELS].set(fcb)

    # Batch rows per grid step: target Bb*L ~= 256 MXU rows; whole batch if smaller.
    bb = min(batch, max(1, TARGET_M // seq_len))
    num_blocks = pl.cdiv(batch, bb)
    batch_pad = num_blocks * bb

    # bf16 HBM->VMEM movement for activations & matmul weights; f32 biases/epilogue.
    x_bf = x.astype(jnp.bfloat16)
    if batch_pad != batch:
        x_bf = jnp.concatenate(
            [x_bf, jnp.zeros((batch_pad - batch, seq_len, hidden), jnp.bfloat16)], axis=0)
    w_all_bf = w_all.astype(jnp.bfloat16)
    fcw_bf = fcw_pad.astype(jnp.bfloat16)

    out = pl.pallas_call(
        cnn_head_kernel,
        out_shape=jax.ShapeDtypeStruct((batch_pad, OUT_PAD), jnp.float32),
        grid=(num_blocks,),
        in_specs=[
            pl.BlockSpec((bb, seq_len, hidden), lambda i: (i, 0, 0)),   # batched activation tile
            pl.BlockSpec(w_all_bf.shape, lambda i: (0, 0, 0)),          # weights: VMEM-resident
            pl.BlockSpec(b_all.shape, lambda i: (0, 0)),
            pl.BlockSpec(fcw_bf.shape, lambda i: (0, 0)),
            pl.BlockSpec(fcb_pad.shape, lambda i: (0, 0)),
        ],
        out_specs=pl.BlockSpec((bb, OUT_PAD), lambda i: (i, 0)),        # dense [Bb,128] store
        compiler_params=pltpu.CompilerParams(
            # Only shard across TCs when there are >= 2 batch blocks; a single sub-µs
            # step gains nothing from megacore splitting.
            dimension_semantics=(("parallel",) if num_blocks > 1 else ("arbitrary",)),
            vmem_limit_bytes=64 * 1024 * 1024,
        ),
    )(x_bf, w_all_bf, b_all, fcw_bf, fcb_pad)
    return out[:batch, :NUM_LABELS]


# ---------------------------------------------------------------------------
# Deterministic parameter init + pure-JAX reference for verification.
# ---------------------------------------------------------------------------
def init_params(key):
    keys = jax.random.split(key, 8)
    convs = []
    for i, k in enumerate(KERNEL_SIZES):
        w = jax.random.normal(keys[2 * i], (k, H, C_OUT), jnp.float32) * 0.05
        b = jax.random.normal(keys[2 * i + 1], (1, C_OUT), jnp.float32) * 0.05
        convs.append((w, b))
    fcw = jax.random.normal(keys[6], (FEAT, NUM_LABELS), jnp.float32) * 0.05
    fcb = jax.random.normal(keys[7], (1, NUM_LABELS), jnp.float32) * 0.05
    return {"convs": convs, "fc": (fcw, fcb)}


def reference_forward(x, params):
    """Independent reference via lax.conv with PyTorch 'same' padding; mirrors the
    kernel's bf16 quantization points so the comparison tolerance stays tight."""
    q = lambda a: a.astype(jnp.bfloat16).astype(jnp.float32)
    xq = q(x)
    pooled = []
    for (w, b), k in zip(params["convs"], KERNEL_SIZES):
        wt = jnp.transpose(q(w), (2, 1, 0))             # [C_out, H, k]  (PyTorch OIH)
        xc = jnp.transpose(xq, (0, 2, 1))               # [B, H, L]      (PyTorch NCH)
        c = lax.conv_general_dilated(
            xc, wt, window_strides=(1,), padding=[PADS[k]],
            dimension_numbers=("NCH", "OIH", "NCH"),
            precision=lax.Precision.HIGHEST)
        c = jnp.maximum(c + b.reshape(1, C_OUT, 1), 0.0)
        pooled.append(jnp.max(c, axis=2))               # [B, C_out]
    feat = jnp.concatenate(pooled, axis=1)              # [B, 384]
    fcw, fcb = params["fc"]
    return jnp.dot(q(feat), q(fcw), precision=lax.Precision.HIGHEST) + fcb


if __name__ == "__main__":
    key = jax.random.PRNGKey(0)
    k_x, k_p = jax.random.split(key)
    # Synthetic DistilBERT last_hidden_state (the backbone itself is TODO(synk) above).
    x = jax.random.normal(k_x, (B, L, H), jnp.float32)
    params = init_params(k_p)

    logits = jax.block_until_ready(cnn_head_forward(x, params))
    ref = jax.block_until_ready(reference_forward(x, params))

    assert logits.shape == (B, NUM_LABELS)
    assert jnp.allclose(logits, ref, rtol=1e-2, atol=1e-2), (logits, ref)

    print("KERNEL_OK")
</pallas_src>

<mosaic_0001>
module attributes {stable_mosaic.version = 11 : i64} {
  func.func @cnn_head_kernel(%arg0: i32, %arg1: memref<2x16x32xbf16, #tpu.memory_space<vmem>>, %arg2: memref<5x32x384xbf16, #tpu.memory_space<vmem>>, %arg3: memref<1x384xf32, #tpu.memory_space<vmem>>, %arg4: memref<384x128xbf16, #tpu.memory_space<vmem>>, %arg5: memref<1x128xf32, #tpu.memory_space<vmem>>, %arg6: memref<2x128xf32, #tpu.memory_space<vmem>>) attributes {dimension_semantics = [#tpu.dimension_semantics<arbitrary>], iteration_bounds = array<i64: 1>, scalar_prefetch = 0 : i64, scratch_operands = 0 : i64, tpu.core_type = #tpu.core_type<tc>, window_params = [{transform_indices = @transform_0, window_bounds = array<i64: 2, 16, 32>}, {pipeline_mode = #tpu.pipeline_mode<synchronous>, transform_indices = @transform_1, window_bounds = array<i64: 5, 32, 384>}, {pipeline_mode = #tpu.pipeline_mode<synchronous>, transform_indices = @transform_2, window_bounds = array<i64: 1, 384>}, {pipeline_mode = #tpu.pipeline_mode<synchronous>, transform_indices = @transform_3, window_bounds = array<i64: 384, 128>}, {pipeline_mode = #tpu.pipeline_mode<synchronous>, transform_indices = @transform_4, window_bounds = array<i64: 1, 128>}, {transform_indices = @transform_5, window_bounds = array<i64: 2, 128>}]} {
    %c0 = arith.constant 0 : index
    %c0_0 = arith.constant 0 : index
    %c0_1 = arith.constant 0 : index
    %0 = vector.load %arg1[%c0, %c0_0, %c0_1] : memref<2x16x32xbf16, #tpu.memory_space<vmem>>, vector<2x16x32xbf16>
    %cst = arith.constant 0.000000e+00 : bf16
    %1 = vector.broadcast %cst : bf16 to vector<2x2x32xbf16>
    %2 = tpu.concatenate %1, %0, %1 in 1 : vector<2x2x32xbf16>, vector<2x16x32xbf16>, vector<2x2x32xbf16> -> vector<2x20x32xbf16>
    %cst_2 = arith.constant 0.000000e+00 : f32
    %3 = vector.broadcast %cst_2 : f32 to vector<32x384xf32>
    %4 = vector.extract_strided_slice %2 {offsets = [0, 0, 0], sizes = [2, 16, 32], strides = [1, 1, 1]} : vector<2x20x32xbf16> to vector<2x16x32xbf16>
    %5 = vector.shape_cast %4 : vector<2x16x32xbf16> to vector<32x32xbf16>
    %c0_3 = arith.constant 0 : index
    %c0_4 = arith.constant 0 : index
    %c0_5 = arith.constant 0 : index
    %6 = vector.load %arg2[%c0_3, %c0_4, %c0_5] : memref<5x32x384xbf16, #tpu.memory_space<vmem>>, vector<1x32x384xbf16>
    %7 = vector.shape_cast %6 : vector<1x32x384xbf16> to vector<32x384xbf16>
    %cst_6 = arith.constant dense<0.000000e+00> : vector<32x384xf32>
    %8 = tpu.matmul %5, %7, %cst_6 {dimension_numbers = #tpu.dot_dimension_numbers<[1], [0], [0], [1], [0, 0, 1, 1], [], []>} : vector<32x32xbf16>, vector<32x384xbf16>, vector<32x384xf32> -> vector<32x384xf32>
    %9 = arith.addf %3, %8 : vector<32x384xf32>
    %10 = vector.extract_strided_slice %2 {offsets = [0, 1, 0], sizes = [2, 16, 32], strides = [1, 1, 1]} : vector<2x20x32xbf16> to vector<2x16x32xbf16>
    %11 = vector.shape_cast %10 : vector<2x16x32xbf16> to vector<32x32xbf16>
    %c1 = arith.constant 1 : index
    %c0_7 = arith.constant 0 : index
    %c0_8 = arith.constant 0 : index
    %12 = vector.load %arg2[%c1, %c0_7, %c0_8] : memref<5x32x384xbf16, #tpu.memory_space<vmem>>, vector<1x32x384xbf16>
    %13 = vector.shape_cast %12 : vector<1x32x384xbf16> to vector<32x384xbf16>
    %cst_9 = arith.constant dense<0.000000e+00> : vector<32x384xf32>
    %14 = tpu.matmul %11, %13, %cst_9 {dimension_numbers = #tpu.dot_dimension_numbers<[1], [0], [0], [1], [0, 0, 1, 1], [], []>} : vector<32x32xbf16>, vector<32x384xbf16>, vector<32x384xf32> -> vector<32x384xf32>
    %15 = arith.addf %9, %14 : vector<32x384xf32>
    %16 = vector.extract_strided_slice %2 {offsets = [0, 2, 0], sizes = [2, 16, 32], strides = [1, 1, 1]} : vector<2x20x32xbf16> to vector<2x16x32xbf16>
    %17 = vector.shape_cast %16 : vector<2x16x32xbf16> to vector<32x32xbf16>
    %c2 = arith.constant 2 : index
    %c0_10 = arith.constant 0 : index
    %c0_11 = arith.constant 0 : index
    %18 = vector.load %arg2[%c2, %c0_10, %c0_11] : memref<5x32x384xbf16, #tpu.memory_space<vmem>>, vector<1x32x384xbf16>
    %19 = vector.shape_cast %18 : vector<1x32x384xbf16> to vector<32x384xbf16>
    %cst_12 = arith.constant dense<0.000000e+00> : vector<32x384xf32>
    %20 = tpu.matmul %17, %19, %cst_12 {dimension_numbers = #tpu.dot_dimension_numbers<[1], [0], [0], [1], [0, 0, 1, 1], [], []>} : vector<32x32xbf16>, vector<32x384xbf16>, vector<32x384xf32> -> vector<32x384xf32>
    %21 = arith.addf %15, %20 : vector<32x384xf32>
    %22 = vector.extract_strided_slice %2 {offsets = [0, 3, 0], sizes = [2, 16, 32], strides = [1, 1, 1]} : vector<2x20x32xbf16> to vector<2x16x32xbf16>
    %23 = vector.shape_cast %22 : vector<2x16x32xbf16> to vector<32x32xbf16>
    %c3 = arith.constant 3 : index
    %c0_13 = arith.constant 0 : index
    %c0_14 = arith.constant 0 : index
    %24 = vector.load %arg2[%c3, %c0_13, %c0_14] : memref<5x32x384xbf16, #tpu.memory_space<vmem>>, vector<1x32x384xbf16>
    %25 = vector.shape_cast %24 : vector<1x32x384xbf16> to vector<32x384xbf16>
    %cst_15 = arith.constant dense<0.000000e+00> : vector<32x384xf32>
    %26 = tpu.matmul %23, %25, %cst_15 {dimension_numbers = #tpu.dot_dimension_numbers<[1], [0], [0], [1], [0, 0, 1, 1], [], []>} : vector<32x32xbf16>, vector<32x384xbf16>, vector<32x384xf32> -> vector<32x384xf32>
    %27 = arith.addf %21, %26 : vector<32x384xf32>
    %28 = vector.extract_strided_slice %2 {offsets = [0, 4, 0], sizes = [2, 16, 32], strides = [1, 1, 1]} : vector<2x20x32xbf16> to vector<2x16x32xbf16>
    %29 = vector.shape_cast %28 : vector<2x16x32xbf16> to vector<32x32xbf16>
    %c4 = arith.constant 4 : index
    %c0_16 = arith.constant 0 : index
    %c0_17 = arith.constant 0 : index
    %30 = vector.load %arg2[%c4, %c0_16, %c0_17] : memref<5x32x384xbf16, #tpu.memory_space<vmem>>, vector<1x32x384xbf16>
    %31 = vector.shape_cast %30 : vector<1x32x384xbf16> to vector<32x384xbf16>
    %cst_18 = arith.constant dense<0.000000e+00> : vector<32x384xf32>
    %32 = tpu.matmul %29, %31, %cst_18 {dimension_numbers = #tpu.dot_dimension_numbers<[1], [0], [0], [1], [0, 0, 1, 1], [], []>} : vector<32x32xbf16>, vector<32x384xbf16>, vector<32x384xf32> -> vector<32x384xf32>
    %33 = arith.addf %27, %32 : vector<32x384xf32>
    %c0_19 = arith.constant 0 : index
    %c0_20 = arith.constant 0 : index
    %34 = vector.load %arg3[%c0_19, %c0_20] : memref<1x384xf32, #tpu.memory_space<vmem>>, vector<1x384xf32>
    %35 = vector.broadcast %34 : vector<1x384xf32> to vector<32x384xf32>
    %36 = arith.addf %33, %35 : vector<32x384xf32>
    %cst_21 = arith.constant 0.000000e+00 : f32
    %37 = vector.broadcast %cst_21 : f32 to vector<32x384xf32>
    %38 = arith.maximumf %36, %37 : vector<32x384xf32>
    %39 = vector.shape_cast %38 : vector<32x384xf32> to vector<2x16x384xf32>
    %cst_22 = arith.constant dense<0xFF800000> : vector<2x384xf32>
    %40 = vector.multi_reduction <maximumf>, %39, %cst_22 [1] : vector<2x16x384xf32> to vector<2x384xf32>
    %41 = arith.truncf %40 : vector<2x384xf32> to vector<2x384xbf16>
    %c0_23 = arith.constant 0 : index
    %c0_24 = arith.constant 0 : index
    %42 = vector.load %arg4[%c0_23, %c0_24] : memref<384x128xbf16, #tpu.memory_space<vmem>>, vector<384x128xbf16>
    %cst_25 = arith.constant dense<0.000000e+00> : vector<2x128xf32>
    %43 = tpu.matmul %41, %42, %cst_25 {dimension_numbers = #tpu.dot_dimension_numbers<[1], [0], [0], [1], [0, 0, 1, 1], [], []>} : vector<2x384xbf16>, vector<384x128xbf16>, vector<2x128xf32> -> vector<2x128xf32>
    %c0_26 = arith.constant 0 : index
    %c0_27 = arith.constant 0 : index
    %44 = vector.load %arg5[%c0_26, %c0_27] : memref<1x128xf32, #tpu.memory_space<vmem>>, vector<1x128xf32>
    %45 = vector.broadcast %44 : vector<1x128xf32> to vector<2x128xf32>
    %46 = arith.addf %43, %45 : vector<2x128xf32>
    %c0_28 = arith.constant 0 : index
    %c0_29 = arith.constant 0 : index
    %47 = vector.load %arg6[%c0_28, %c0_29] : memref<2x128xf32, #tpu.memory_space<vmem>>, vector<2x128xf32>
    tpu.vector_store %arg6[%c0_28, %c0_29], %46 {strides = array<i32>} : memref<2x128xf32, #tpu.memory_space<vmem>>, vector<2x128xf32>,
    return
  }
  func.func @transform_0(%arg0: i32) -> (i32, i32, i32) {
    %c0_i32 = arith.constant 0 : i32
    %c0_i32_0 = arith.constant 0 : i32
    %c0_i32_1 = arith.constant 0 : i32
    return %arg0, %c0_i32, %c0_i32_0 : i32, i32, i32
  }
  func.func @transform_1(%arg0: i32) -> (i32, i32, i32) {
    %c0_i32 = arith.constant 0 : i32
    %c0_i32_0 = arith.constant 0 : i32
    %c0_i32_1 = arith.constant 0 : i32
    %c0_i32_2 = arith.constant 0 : i32
    return %c0_i32, %c0_i32_0, %c0_i32_1 : i32, i32, i32
  }
  func.func @transform_2(%arg0: i32) -> (i32, i32) {
    %c0_i32 = arith.constant 0 : i32
    %c0_i32_0 = arith.constant 0 : i32
    %c0_i32_1 = arith.constant 0 : i32
    return %c0_i32, %c0_i32_0 : i32, i32
  }
  func.func @transform_3(%arg0: i32) -> (i32, i32) {
    %c0_i32 = arith.constant 0 : i32
    %c0_i32_0 = arith.constant 0 : i32
    %c0_i32_1 = arith.constant 0 : i32
    return %c0_i32, %c0_i32_0 : i32, i32
  }
  func.func @transform_4(%arg0: i32) -> (i32, i32) {
    %c0_i32 = arith.constant 0 : i32
    %c0_i32_0 = arith.constant 0 : i32
    %c0_i32_1 = arith.constant 0 : i32
    return %c0_i32, %c0_i32_0 : i32, i32
  }
  func.func @transform_5(%arg0: i32) -> (i32, i32) {
    %c0_i32 = arith.constant 0 : i32
    %c0_i32_0 = arith.constant 0 : i32
    return %arg0, %c0_i32 : i32, i32
  }
}

</mosaic_0001>

<bundles_post_ra>
// kernel: tpu_custom_call.1
= control target key start
LH: loop header
LB: loop body
LE: loop exit
PB: predicated region body
PF: predicated region fallthrough
CT: control target
= control target key end

     0   :  { %10 = vsyncpa [#allocation3], 0  ;;  %s1857_s0 = inlined_call_operand.hbm [shape: bf16[2,16,32], index: 0, kind: input, shape index: {}]   ;;  %s1858_s1 = inlined_call_operand.hbm [shape: bf16[5,32,384], index: 1, kind: input, shape index: {}]   ;;  %s1859_s2 = inlined_call_operand.vmem [shape: f32[1,384], index: 2, kind: input, shape index: {}]   ;;  %s1860_s3 = inlined_call_operand.hbm [shape: bf16[384,128], index: 3, kind: input, shape index: {}]   ;;  %s1861_s4 = inlined_call_operand.vmem [shape: f32[1,128], index: 4, kind: input, shape index: {}]   ;;  %s1862_s5 = inlined_call_operand.hbm [shape: f32[2,128], index: 5, kind: output, shape index: {}]  }
   0x1   :  { %11 = vsyncpa [#allocation6], 0 }
   0x2   :  { %12 = vsyncpa [#allocation4], 0  ;;  %s1682_s18 = smov [#allocation5]  }
   0x3   :  { %s30_s19 = sshll.u32 %s1682_s18, 4  ;;  %s31_s19 = int_to_ptr.vmem [resolvable:$true] %s30_s19 }
   0x4   :  { %s1604_s20 = scalar_lea.vmem %s31_s19, 3840  ;;  %p1609_p1 = scmp.lt.s32.totalorder %s31_s19, %s31_s19 }
   0x5   :  { %p1605_p0 = scmp.ne.s32.totalorder %s31_s19, %s1604_s20  ;;  %p1610_p2 = scmp.lt.s32.totalorder %s1604_s20, %s1604_s20 }
   0x7   :  { %p1611_p3 = por %p1610_p2, %p1609_p1 }
   0x9   :  { %p1612_p4 = pnand %p1611_p3, %p1605_p0 }
   0xb   :  { %1615 = shalt.err (!%p1612_p4)
}
   0xc   :  { %s1683_s21 = smov 192   ;;  %s1684_s22 = smov 12  }
   0xd   :  { %36 = dma.hbm_to_vmem [thread:$0]  %s1858_s1, 3840, %s31_s19, [#allocation6], %s1683_s21, %s1683_s21, %s1684_s22  }
   0xe   :  { %s1685_s25 = smov [#allocation2]  }
   0xf   :  { %s18_s26 = sshll.u32 %s1685_s25, 4  ;;  %s19_s26 = int_to_ptr.vmem [resolvable:$true] %s18_s26 }
  0x10   :  { %s1624_s27 = scalar_lea.vmem %s19_s26, 256  ;;  %p1629_p6 = scmp.lt.s32.totalorder %s19_s26, %s19_s26 }
  0x11   :  { %p1625_p5 = scmp.ne.s32.totalorder %s19_s26, %s1624_s27  ;;  %p1630_p7 = scmp.lt.s32.totalorder %s1624_s27, %s1624_s27 }
  0x13   :  { %p1631_p8 = por %p1630_p7, %p1629_p6 }
  0x15   :  { %p1632_p9 = pnand %p1631_p8, %p1625_p5 }
  0x17   :  { %1635 = shalt.err (!%p1632_p9)
}
  0x18   :  { %s1686_s28 = smov 64   ;;  %s1687_s29 = smov 4  }
  0x19   :  { %24 = dma.hbm_to_vmem [thread:$0]  %s1857_s0, 256, %s19_s26, [#allocation3], %s1686_s28, %s1686_s28, %s1687_s29  }
  0x1a   :  { %s1688_s7 = smov [#allocation7]  }
  0x1b   :  { %s44_s8 = sshll.u32 %s1688_s7, 4  ;;  %s45_s8 = int_to_ptr.vmem [resolvable:$true] %s44_s8 }
  0x1c   :  { %s1644_s1 = scalar_lea.vmem %s45_s8, 3072  ;;  %p1649_p11 = scmp.lt.s32.totalorder %s45_s8, %s45_s8 }
  0x1d   :  { %p1645_p10 = scmp.ne.s32.totalorder %s45_s8, %s1644_s1  ;;  %p1650_p12 = scmp.lt.s32.totalorder %s1644_s1, %s1644_s1 }
  0x1f   :  { %p1651_p13 = por %p1650_p12, %p1649_p11 }
  0x21   :  { %p1652_p0 = pnand %p1651_p13, %p1645_p10 }
  0x23   :  { %1655 = shalt.err (!%p1652_p0)
}
  0x24   :  { %50 = dma.hbm_to_vmem [thread:$0]  %s1860_s3, 3072, %s45_s8, [#allocation6], %s1686_s28, %s1686_s28, %s1687_s29  }
  0x25   :  { %1676 = dma.done.wait [#allocation3], 256  }
  0x26   :  { %1677 = vsyncadd [#allocation3], 4294967040 }
  0x27   :  { %1678 = dma.done.wait [#allocation6], 6912  }
  0x28   :  { %1679 = vsyncadd [#allocation6], 4294960384  ;;  %v1689_v0 = vmov 0   ;;  %v1530_v1 = vld [vmem:[#allocation5 + $0x4c] ss:$12 sps:$4 sm:$0xff]   ;;  %v1539_v8 = vld [vmem:[#allocation2] sm:$0xff]  }
  0x29   :  { %196 = vmatprep.mubr.bf16.mxu0 %v1689_v0  ;;  %v1532_v2 = vld [vmem:[#allocation5 + $0x48] ss:$12 sps:$4 sm:$0xff]   ;;  %176 = vmatprep.subr.bf16.mxu0 %v1530_v1  ;;  %v1533_v3 = vld [vmem:[#allocation5 + $0x50] ss:$12 sps:$4 sm:$0xff]   ;;  %v1537_v6 = vld [vmem:[#allocation5 + $0x38] ss:$12 sps:$4 sm:$0xff]  }
  0x2a   :  { %177 = vmatpush1.bf16.msra.mxu0 %v1532_v2  ;;  %v1534_v4 = vld [vmem:[#allocation5 + $0x34] ss:$12 sps:$4 sm:$0xff]   ;;  %v1536_v5 = vld [vmem:[#allocation5 + $0x30] ss:$12 sps:$4 sm:$0xff]   ;;  %1459 = vmatprep.subr.bf16.mxu1 %v1533_v3  ;;  %vm79_vm0 = vcmask 1040384   ;;  %v77_v10 = vrot.slane %v1539_v8, 7 }
  0x2b   :  { %1460 = vmatpush3.bf16.msra.mxu1 %v1533_v3  ;;  %178 = vmatprep.subr.bf16.mxu0 %v1534_v4  ;;  %v1538_v7 = vld [vmem:[#allocation5 + $0x20] ss:$12 sps:$4 sm:$0xff]   ;;  %v1540_v9 = vld [vmem:[#allocation2 + $0x8] sm:$0xff]   ;;  %vm95_vm1 = vsmask.f32 7424  ;;  %vm157_vm2 = vcmask 261120  }
  0x2c   :  { %1461 = vmatprep.subr.bf16.mxu1 %v1537_v6  ;;  %v1543_v11 = vld [vmem:[#allocation5 + $0x1c] ss:$12 sps:$4 sm:$0xff]   ;;  %v78_v12 = vrot.slane %v1540_v9, 7  ;;  %v1733_v13 = vsel %vm79_vm0, 0, %v77_v10  ;;  %v1735_v14 = vsel %vm79_vm0, %v77_v10, 0  ;;  %vm408_vm3 = vcmask 1046528  }
  0x2d   :  { %v96_v15 = vshrl.u32 %v1733_v13, 16  ;;  %v98_v16 = vshll.u32 %v1733_v13, 16  ;;  %v102_v17 = vshll.u32 %v1735_v14, 16  ;;  %v1541_v29 = vld [vmem:[#allocation5 + $0x18] ss:$12 sps:$4 sm:$0xff]   ;;  %v580_v38 = vshrl.u32 %v1735_v14, 16 }
  0x2e   :  { %179 = vmatpush1.bf16.msra.mxu0 %v1536_v5  ;;  %v1740_v18 = vsel %vm79_vm0, 0, %v78_v12  ;;  %v1742_v19 = vsel %vm79_vm0, %v78_v12, 0  ;;  %v1546_v31 = vld [vmem:[#allocation5 + $0x4] ss:$12 sps:$4 sm:$0xff]   ;;  %v1547_v32 = vld [vmem:[#allocation5 + $0x8] ss:$12 sps:$4 sm:$0xff]  }
  0x2f   :  { %1467 = vmatprep.subr.bf16.mxu0 %v1538_v7  ;;  %1462 = vmatpush3.bf16.msra.mxu1 %v1537_v6  ;;  %v106_v20 = vshrl.u32 %v1740_v18, 16  ;;  %v108_v21 = vshll.u32 %v1740_v18, 16  ;;  %v100_v22 = vrot.slane %v98_v16, 1  ;;  %v104_v23 = vrot.slane %v102_v17, 1  ;;  %v1544_v34 = vld [vmem:[#allocation5] ss:$12 sps:$4 sm:$0xff]  }
  0x30   :  { %314 = vmatprep.subr.bf16.mxu1 %v1543_v11  ;;  %v112_v25 = vshll.u32 %v1742_v19, 16  ;;  %v1550_v35 = vld [vmem:[#allocation5 + $0x7c] ss:$12 sps:$4 sm:$0xff]   ;;  %v1551_v36 = vld [vmem:[#allocation5 + $0x80] ss:$12 sps:$4 sm:$0xff]   ;;  %v1758_v37 = vrot.slane %v96_v15, 1 }
  0x31   :  { %v110_v24 = vrot.slane %v108_v21, 1  ;;  %v101_v26 = vor.u32 %v100_v22, %v96_v15  ;;  %v1555_v39 = vld [vmem:[#allocation5 + $0x68] ss:$12 sps:$4 sm:$0xff]   ;;  %v583_v40 = vrot.slane %v102_v17, 2  ;;  %v409_v41 = vrot.slane %v1733_v13, 1  ;;  %s1692_s12 = smov [#allocation8]  }
  0x32   :  { %v114_v28 = vrot.slane %v112_v25, 1  ;;  %v410_v42 = vrot.slane %v1735_v14, 1  ;;  %v412_v43 = vrot.slane %v1740_v18, 1  ;;  %v413_v44 = vrot.slane %v1742_v19, 1  ;;  %v1559_v46 = vld [vmem:[#allocation5 + $0xac] ss:$12 sps:$4 sm:$0xff]  }
  0x33   :  { %v111_v27 = vor.u32 %v110_v24, %v106_v20  ;;  %v105_v30 = vsel %vm95_vm1, %v101_v26, %v104_v23  ;;  %v578_v45 = vrot.slane %v98_v16, 2  ;;  %v582_v47 = vrot.slane %v580_v38, 1  ;;  %v1548_v49 = vld [vmem:[#allocation5 + $0x78] ss:$12 sps:$4 sm:$0xff]   ;;  %v1552_v51 = vld [vmem:[#allocation5 + $0x60] ss:$12 sps:$4 sm:$0xff]  }
  0x34   :  { %1339 = vmatmul.mubr.msk.bf16.vlgmr.msra.gmra.mxu0 %vm157_vm2, %v105_v30  ;;  %1463 = vmatprep.mubr.msk.bf16.mxu1 %vm157_vm2, %v105_v30  ;;  %v589_v48 = vshrl.u32 %v1742_v19, 16  ;;  %v1554_v50 = vld [vmem:[#allocation5 + $0x64] ss:$12 sps:$4 sm:$0xff]   ;;  %v411_v53 = vsel %vm408_vm3, %v409_v41, %v410_v42  ;;  %v1557_v54 = vld [vmem:[#allocation5 + $0xa8] ss:$12 sps:$4 sm:$0xff]   ;;  %v414_v57 = vsel %vm408_vm3, %v412_v43, %v413_v44  ;;  %v586_v63 = vrot.slane %v106_v20, 1 }
  0x35   :  { %v115_v33 = vsel %vm95_vm1, %v111_v27, %v114_v28  ;;  %1468 = vmatpush3.bf16.msra.mxu0 %v1538_v7  ;;  %206 = vmatprep.mubr.bf16.mxu0 %v1689_v0  ;;  %v1556_v52 = vld [vmem:[#allocation5 + $0xb0] ss:$12 sps:$4 sm:$0xff]   ;;  %v1562_v55 = vld [vmem:[#allocation5 + $0x94] ss:$12 sps:$4 sm:$0xff]   ;;  %v1563_v56 = vld [vmem:[#allocation5 + $0x98] ss:$12 sps:$4 sm:$0xff]   ;;  %v579_v59 = vor.u32 %v578_v45, %v1758_v37  ;;  %v584_v60 = vor.u32 %v583_v40, %v582_v47 }
  0x36   :  { %1464 = vmatmul.mubr.msk.bf16.vlgmr.msra.gmra.mxu1 %vm157_vm2, %v115_v33  ;;  %1469 = vmatprep.subr.bf16.mxu0 %v1547_v32  ;;  %v1560_v58 = vld [vmem:[#allocation5 + $0x90] ss:$12 sps:$4 sm:$0xff]   ;;  %vm576_vm4 = vsmask.f32 6400  ;;  %v1567_v62 = vld [vmem:[#allocation5 + $0xe0] ss:$12 sps:$4 sm:$0xff]  }
  0x37   :  { %315 = vmatpush1.bf16.msra.mxu1 %v1541_v29  ;;  %334 = vmatprep.mubr.bf16.mxu1 %v1689_v0  ;;  %v1566_v61 = vld [vmem:[#allocation5 + $0xdc] ss:$12 sps:$4 sm:$0xff]   ;;  %v587_v1 = vrot.slane %v108_v21, 2  ;;  %v592_v2 = vrot.slane %v112_v25, 2  ;;  %v591_v3 = vrot.slane %v589_v48, 1  ;;  %v585_v4 = vsel %vm576_vm4, %v579_v59, %v584_v60  ;;  %v1577_v24 = vld [vmem:[#allocation7 + $0x70] sm:$0xff]  }
  0x38   :  { %316 = vmatprep.subr.bf16.mxu1 %v1546_v31  ;;  %v1571_v5 = vld [vmem:[#allocation5 + $0xc8] ss:$12 sps:$4 sm:$0xff]   ;;  %v757_v8 = vrot.slane %v1733_v13, 2  ;;  %v758_v9 = vrot.slane %v1735_v14, 2  ;;  %v1564_v10 = vld [vmem:[#allocation5 + $0xd8] ss:$12 sps:$4 sm:$0xff]  }
  0x39   :  { %1470 = vmatpush3.bf16.msra.mxu0 %v1547_v32  ;;  %v588_v6 = vor.u32 %v587_v1, %v586_v63  ;;  %v593_v7 = vor.u32 %v592_v2, %v591_v3  ;;  %vm756_vm5 = vcmask 1045504   ;;  %v1570_v12 = vld [vmem:[#allocation5 + $0xc4] ss:$12 sps:$4 sm:$0xff]   ;;  %v1568_v16 = vld [vmem:[#allocation5 + $0xc0] ss:$12 sps:$4 sm:$0xff]   ;;  %v761_v14 = vrot.slane %v1742_v19, 2 }
  0x3a   :  { %474 = vmatprep.subr.bf16.mxu0 %v1550_v35  ;;  %v759_v15 = vsel %vm756_vm5, %v757_v8, %v758_v9  ;;  %v1572_v20 = vld [vmem:[#allocation7 + $0xb8] sm:$0xff]   ;;  %v1690_v21 = vmov 0.0   ;;  %v1576_v23 = vld [vmem:[#allocation7 + $0xa8] sm:$0xff]   ;;  %v1578_v25 = vld [vmem:[#allocation7 + $0x30] sm:$0xff]   ;;  %vm1691_vm6 = vmmov 0   ;;  %vm1080_vm7 = vcmask 1041409  }
  0x3b   :  { %317 = vmatpush1.bf16.msra.mxu1 %v1544_v34  ;;  %v594_v11 = vsel %vm576_vm4, %v588_v6, %v593_v7  ;;  %v1574_v19 = vld [vmem:[#allocation7 + $0x78] sm:$0xff]   ;;  %v1580_v26 = vld [vmem:[#allocation7 + $0x68] sm:$0xff]   ;;  %v1583_v29 = vld [vmem:[#allocation7 + $0x60] sm:$0xff]   ;;  %s1321_s13 = sshll.u32 %s1692_s12, 4  ;;  %s1322_s13 = int_to_ptr.vmem [resolvable:$true] %s1321_s13 }
  0x3c   :  { %1475 = vmatprep.subr.bf16.mxu1 %v1551_v36  ;;  %1340 = vmatmul.mubr.msk.bf16.gmra.mxu0 %vm157_vm2, %v115_v33  ;;  %v1575_v22 = vld [vmem:[#allocation7 + $0x38] sm:$0xff]   ;;  %v1581_v27 = vld [vmem:[#allocation7 + $0x28] sm:$0xff]   ;;  %v1584_v30 = vld [vmem:[#allocation7 + $0x20] sm:$0xff]   ;;  %s1656_s14 = scalar_lea.vmem %s1322_s13, 32  ;;  %p1661_p2 = scmp.lt.s32.totalorder %s1322_s13, %s1322_s13 }
  0x3d   :  { %1471 = vmatprep.mubr.msk.bf16.mxu0 %vm157_vm2, %v1733_v13  ;;  %v1582_v28 = vld [vmem:[#allocation7 + $0x98] sm:$0xff]   ;;  %v1585_v31 = vld [vmem:[#allocation7 + $0x90] sm:$0xff]   ;;  %v1588_v34 = vld [vmem:[#allocation7 + $0x88] sm:$0xff]   ;;  %p1657_p1 = scmp.ne.s32.totalorder %s1322_s13, %s1656_s14  ;;  %p1662_p3 = scmp.lt.s32.totalorder %s1656_s14, %s1656_s14 }
  0x3e   :  { %1349 = vmatmul.mubr.msk.bf16.vlgmr.msra.gmra.mxu1 %vm157_vm2, %v1733_v13  ;;  %v760_v13 = vrot.slane %v1740_v18, 2  ;;  %v1586_v32 = vld [vmem:[#allocation7 + $0x58] sm:$0xff]   ;;  %v1589_v35 = vld [vmem:[#allocation7 + $0x50] sm:$0xff]   ;;  %v1591_v37 = vld [vmem:[#allocation7 + $0x80] sm:$0xff]  }
  0x3f   :  { %344 = vmatprep.mubr.bf16.mxu1 %v1689_v0  ;;  %1476 = vmatpush3.bf16.msra.mxu1 %v1551_v36  ;;  %v1587_v33 = vld [vmem:[#allocation7 + $0x18] sm:$0xff]   ;;  %v1590_v36 = vld [vmem:[#allocation7 + $0x10] sm:$0xff]   ;;  %v1592_v38 = vld [vmem:[#allocation7 + $0x48] sm:$0xff]   ;;  %p1663_p4 = por %p1662_p3, %p1661_p2 }
  0x40   :  { %1477 = vmatprep.subr.bf16.mxu1 %v1555_v39  ;;  %v762_v17 = vsel %vm756_vm5, %v760_v13, %v761_v14  ;;  %v1594_v40 = vld [vmem:[#allocation7 + $0x40] sm:$0xff]  }
  0x41   :  { %v1595_v41 = vld [vmem:[#allocation7] sm:$0xff]   ;;  %p1664_p5 = pnand %p1663_p4, %p1657_p1 }
  0x43   :  { %1478 = vmatpush3.bf16.msra.mxu1 %v1555_v39  ;;  %v1593_v39 = vld [vmem:[#allocation7 + $0x8] sm:$0xff]  }
  0x44   :  { %654 = vmatprep.subr.bf16.mxu1 %v1559_v46  ;;  %1472 = vmatmul.mubr.msk.bf16.vlgmr.msra.gmra.mxu0 %vm157_vm2, %v1740_v18 }
  0x45   :  { %475 = vmatpush1.bf16.msra.mxu0 %v1548_v49  ;;  %494 = vmatprep.mubr.bf16.mxu0 %v1689_v0 }
  0x46   :  { %1350 = vmatmul.mubr.msk.bf16.gmra.mxu1 %vm157_vm2, %v1740_v18  ;;  %476 = vmatprep.subr.bf16.mxu0 %v1554_v50  ;;  %v1573_v18 = vld [vmem:[#allocation7 + $0xb0] sm:$0xff]  }
  0x47   :  { %1479 = vmatprep.mubr.msk.bf16.mxu1 %vm157_vm2, %v411_v53 }
  0x49   :  { %477 = vmatpush1.bf16.msra.mxu0 %v1552_v51 }
  0x4a   :  { %1483 = vmatprep.subr.bf16.mxu0 %v1556_v52 }
  0x4c   :  { %1359 = vmatmul.mubr.msk.bf16.vlgmr.msra.gmra.mxu0 %vm157_vm2, %v411_v53 }
  0x4d   :  { %1484 = vmatpush3.bf16.msra.mxu0 %v1556_v52  ;;  %504 = vmatprep.mubr.bf16.mxu0 %v1689_v0 }
  0x4e   :  { %1480 = vmatmul.mubr.msk.bf16.vlgmr.msra.gmra.mxu1 %vm157_vm2, %v414_v57  ;;  %1485 = vmatprep.subr.bf16.mxu0 %v1563_v56 }
  0x4f   :  { %655 = vmatpush1.bf16.msra.mxu1 %v1557_v54  ;;  %674 = vmatprep.mubr.bf16.mxu1 %v1689_v0 }
  0x50   :  { %656 = vmatprep.subr.bf16.mxu1 %v1562_v55 }
  0x51   :  { %1486 = vmatpush3.bf16.msra.mxu0 %v1563_v56 }
  0x52   :  { %822 = vmatprep.subr.bf16.mxu0 %v1566_v61 }
  0x53   :  { %657 = vmatpush1.bf16.msra.mxu1 %v1560_v58 }
  0x54   :  { %1491 = vmatprep.subr.bf16.mxu1 %v1567_v62  ;;  %1360 = vmatmul.mubr.msk.bf16.gmra.mxu0 %vm157_vm2, %v414_v57 }
  0x55   :  { %1487 = vmatprep.mubr.msk.bf16.mxu0 %vm157_vm2, %v585_v4 }
  0x56   :  { %1369 = vmatmul.mubr.msk.bf16.vlgmr.msra.gmra.mxu1 %vm157_vm2, %v585_v4 }
  0x57   :  { %684 = vmatprep.mubr.bf16.mxu1 %v1689_v0  ;;  %1492 = vmatpush3.bf16.msra.mxu1 %v1567_v62 }
  0x58   :  { %1493 = vmatprep.subr.bf16.mxu1 %v1571_v5 }
  0x5b   :  { %1494 = vmatpush3.bf16.msra.mxu1 %v1571_v5 }
  0x5c   :  { %1488 = vmatmul.mubr.msk.bf16.vlgmr.msra.gmra.mxu0 %vm157_vm2, %v594_v11  ;;  %1499 = vmatprep.subr.bf16.mxu1 %v1690_v21 }
  0x5d   :  { %823 = vmatpush1.bf16.msra.mxu0 %v1564_v10  ;;  %842 = vmatprep.mubr.bf16.mxu0 %v1689_v0 }
  0x5e   :  { %1370 = vmatmul.mubr.msk.bf16.gmra.mxu1 %vm157_vm2, %v594_v11  ;;  %824 = vmatprep.subr.bf16.mxu0 %v1570_v12 }
  0x5f   :  { %1495 = vmatprep.mubr.msk.bf16.mxu1 %vm157_vm2, %v759_v15 }
  0x61   :  { %825 = vmatpush1.bf16.msra.mxu0 %v1568_v16 }
  0x62   :  { %1428 = vmatprep.subr.bf16.mxu0 %v1574_v19 }
  0x64   :  { %1379 = vmatmul.mubr.msk.bf16.vlgmr.msra.gmra.mxu0 %vm157_vm2, %v759_v15  ;;  %v926_v15 = vlaneseq }
  0x65   :  { %852 = vmatprep.mubr.bf16.mxu0 %v1689_v0  ;;  %1429 = vmatpush3.bf16.msra.mxu0 %v1575_v22  ;;  %v1579_v0 = vld [vmem:[#allocation7 + $0xa0] sm:$0xff]  }
  0x66   :  { %1496 = vmatmul.mubr.msk.bf16.vlgmr.msra.gmra.mxu1 %vm157_vm2, %v762_v17  ;;  %1430 = vmatprep.subr.bf16.mxu0 %v1577_v24 }
  0x67   :  { %1500 = vmatpush3.bf16.msra.mxu1 %v1572_v20  ;;  %1515 = vmatprep.mubr.msk.bf16.mxu1 %vm1691_vm6, %v1690_v21  ;;  %v927_v20 = vshrl.u32 %v926_v15, 7 }
  0x68   :  { %1501 = vmatprep.subr.bf16.mxu1 %v1690_v21 }
  0x69   :  { %1431 = vmatpush3.bf16.msra.mxu0 %v1578_v25  ;;  %v936_v24 = vsub.s32 2, %v927_v20 }
  0x6a   :  { %1432 = vmatprep.subr.bf16.mxu0 %v1580_v26  ;;  %v932_v26 = vsub.s32 1, %v927_v20 }
  0x6b   :  { %1502 = vmatpush3.bf16.msra.mxu1 %v1573_v18 }
  0x6c   :  { %1380 = vmatmul.mubr.msk.bf16.gmra.mxu0 %vm157_vm2, %v762_v17  ;;  %1503 = vmatprep.subr.bf16.mxu1 %v1690_v21 }
  0x6d   :  { %1433 = vmatpush3.bf16.msra.mxu0 %v1581_v27 }
  0x6e   :  { %1434 = vmatprep.subr.bf16.mxu0 %v1583_v29 }
  0x6f   :  { %1504 = vmatpush3.bf16.msra.mxu1 %v1576_v23  ;;  %v928_v23 = vsub.s32 0, %v927_v20 }
  0x70   :  { %1505 = vmatprep.subr.bf16.mxu1 %v1690_v21 }
  0x71   :  { %1435 = vmatpush3.bf16.msra.mxu0 %v1584_v30 }
  0x72   :  { %1436 = vmatprep.subr.bf16.mxu0 %v1586_v32 }
  0x73   :  { %1506 = vmatpush3.bf16.msra.mxu1 %v1579_v0  ;;  %v924_v0 = vld [vmem:[%s1859_s2] sm:$0x7] }
  0x74   :  { %1507 = vmatprep.subr.bf16.mxu1 %v1690_v21 }
  0x75   :  { %1437 = vmatpush3.bf16.msra.mxu0 %v1587_v33 }
  0x76   :  { %1438 = vmatprep.subr.bf16.mxu0 %v1589_v35  ;;  %v937_v35 = vrot.slane %v924_v0, %v936_v24 }
  0x77   :  { %1508 = vmatpush3.bf16.msra.mxu1 %v1582_v28 }
  0x78   :  { %1509 = vmatprep.subr.bf16.mxu1 %v1690_v21 }
  0x79   :  { %1439 = vmatpush3.bf16.msra.mxu0 %v1590_v36 }
  0x7a   :  { %1440 = vmatprep.subr.bf16.mxu0 %v1592_v38 }
  0x7b   :  { %1510 = vmatpush3.bf16.msra.mxu1 %v1585_v31 }
  0x7c   :  { %1511 = vmatprep.subr.bf16.mxu1 %v1690_v21 }
  0x7d   :  { %1441 = vmatpush3.bf16.msra.mxu0 %v1593_v39 }
  0x7e   :  { %1442 = vmatprep.subr.bf16.mxu0 %v1594_v40  ;;  %v1828_v40 = vrot.slane %v924_v0, %v932_v26 }
  0x7f   :  { %1512 = vmatpush3.bf16.msra.mxu1 %v1588_v34  ;;  %v1826_v34 = vrot.slane %v924_v0, %v928_v23 }
  0x80   :  { %1513 = vmatprep.subr.bf16.mxu1 %v1690_v21 }
  0x81   :  { %1443 = vmatpush3.bf16.msra.mxu0 %v1595_v41 }
  0x83   :  { %1514 = vmatpush3.bf16.msra.mxu1 %v1591_v37 }
  0xf4   :  { %v198_v42 = vpop.f32.mrf.mxu0 }
  0xf6   :  { %v1465_v43 = vpop.f32.mrf.mxu1  ;;  %v200_v44 = vpop.f32.mrf.mxu0 }
  0xf8   :  { %v251_v45 = vpop.f32.mrf.mxu1  ;;  %v202_v46 = vpop.f32.mrf.mxu0 }
  0xfa   :  { %v1809_v47 = vpop.f32.mrf.mxu1  ;;  %v204_v48 = vpop.f32.mrf.mxu0 }
  0xfc   :  { %v1811_v49 = vpop.f32.mrf.mxu1  ;;  %v208_v50 = vpop.f32.mrf.mxu0 }
  0xfe   :  { %v336_v51 = vpop.f32.mrf.mxu1  ;;  %v210_v52 = vpop.f32.mrf.mxu0 }
  0xff   :  { %v337_v27 = vadd.f32 %v336_v51, %v198_v42 }
 0x100   :  { %v338_v53 = vpop.f32.mrf.mxu1  ;;  %v212_v54 = vpop.f32.mrf.mxu0 }
 0x101   :  { %v339_v31 = vadd.f32 %v338_v53, %v200_v44 }
 0x102   :  { %v340_v55 = vpop.f32.mrf.mxu1  ;;  %v1813_v56 = vpop.f32.mrf.mxu0 }
 0x103   :  { %v341_v36 = vadd.f32 %v340_v55, %v202_v46 }
 0x104   :  { %v342_v57 = vpop.f32.mrf.mxu1  ;;  %v1473_v58 = vpop.f32.mrf.mxu0 }
 0x105   :  { %v398_v29 = vadd.f32 %v1473_v58, %v1465_v43  ;;  %v343_v41 = vadd.f32 %v342_v57, %v204_v48 }
 0x106   :  { %v346_v59 = vpop.f32.mrf.mxu1  ;;  %v389_v60 = vpop.f32.mrf.mxu0 }
 0x107   :  { %v390_v37 = vadd.f32 %v389_v60, %v251_v45  ;;  %v347_v15 = vadd.f32 %v346_v59, %v208_v50 }
 0x108   :  { %v348_v61 = vpop.f32.mrf.mxu1  ;;  %v1474_v62 = vpop.f32.mrf.mxu0 }
 0x109   :  { %v349_v43 = vadd.f32 %v348_v61, %v210_v52  ;;  %v401_v44 = vadd.f32 %v1474_v62, %v1809_v47 }
 0x10a   :  { %v350_v63 = vpop.f32.mrf.mxu1  ;;  %v392_v1 = vpop.f32.mrf.mxu0 }
 0x10b   :  { %v351_v23 = vadd.f32 %v350_v63, %v212_v54  ;;  %v393_v60 = vadd.f32 %v392_v1, %v1811_v49 }
 0x10c   :  { %v352_v2 = vpop.f32.mrf.mxu1  ;;  %v496_v3 = vpop.f32.mrf.mxu0 }
 0x10d   :  { %v564_v32 = vadd.f32 %v496_v3, %v337_v27  ;;  %v353_v59 = vadd.f32 %v352_v2, %v1813_v56 }
 0x10e   :  { %v1481_v4 = vpop.f32.mrf.mxu1  ;;  %v498_v5 = vpop.f32.mrf.mxu0 }
 0x10f   :  { %v572_v38 = vadd.f32 %v1481_v4, %v398_v29  ;;  %v565_v42 = vadd.f32 %v498_v5, %v339_v31 }
 0x110   :  { %v549_v6 = vpop.f32.mrf.mxu1  ;;  %v500_v7 = vpop.f32.mrf.mxu0 }
 0x111   :  { %v566_v53 = vadd.f32 %v549_v6, %v390_v37  ;;  %v567_v24 = vadd.f32 %v500_v7, %v341_v36 }
 0x112   :  { %v1482_v8 = vpop.f32.mrf.mxu1  ;;  %v502_v9 = vpop.f32.mrf.mxu0 }
 0x113   :  { %v575_v4 = vadd.f32 %v1482_v8, %v401_v44  ;;  %v568_v5 = vadd.f32 %v502_v9, %v343_v41 }
 0x114   :  { %v552_v10 = vpop.f32.mrf.mxu1  ;;  %v506_v11 = vpop.f32.mrf.mxu0 }
 0x115   :  { %v569_v62 = vadd.f32 %v552_v10, %v393_v60  ;;  %v570_v6 = vadd.f32 %v506_v11, %v347_v15 }
 0x116   :  { %v676_v12 = vpop.f32.mrf.mxu1  ;;  %v508_v16 = vpop.f32.mrf.mxu0 }
 0x117   :  { %v744_v51 = vadd.f32 %v676_v12, %v564_v32  ;;  %v571_v7 = vadd.f32 %v508_v16, %v349_v43 }
 0x118   :  { %v678_v13 = vpop.f32.mrf.mxu1  ;;  %v510_v14 = vpop.f32.mrf.mxu0 }
 0x119   :  { %v745_v46 = vadd.f32 %v678_v13, %v565_v42  ;;  %v573_v8 = vadd.f32 %v510_v14, %v351_v23 }
 0x11a   :  { %v680_v17 = vpop.f32.mrf.mxu1  ;;  %v1815_v21 = vpop.f32.mrf.mxu0 }
 0x11b   :  { %v747_v52 = vadd.f32 %v680_v17, %v567_v24  ;;  %v574_v2 = vadd.f32 %v1815_v21, %v353_v59 }
 0x11c   :  { %v682_v18 = vpop.f32.mrf.mxu1  ;;  %v1489_v19 = vpop.f32.mrf.mxu0 }
 0x11d   :  { %v752_v58 = vadd.f32 %v1489_v19, %v572_v38  ;;  %v748_v13 = vadd.f32 %v682_v18, %v568_v5 }
 0x11e   :  { %v1817_v22 = vpop.f32.mrf.mxu1  ;;  %v729_v25 = vpop.f32.mrf.mxu0 }
 0x11f   :  { %v746_v48 = vadd.f32 %v729_v25, %v566_v53  ;;  %v750_v16 = vadd.f32 %v1817_v22, %v570_v6 }
 0x120   :  { %v1822_v28 = vpop.f32.mrf.mxu1  ;;  %v1490_v30 = vpop.f32.mrf.mxu0 }
 0x121   :  { %v755_v12 = vadd.f32 %v1490_v30, %v575_v4  ;;  %v751_v14 = vadd.f32 %v1822_v28, %v571_v7 }
 0x122   :  { %v1824_v33 = vpop.f32.mrf.mxu1  ;;  %v732_v39 = vpop.f32.mrf.mxu0 }
 0x123   :  { %v749_v25 = vadd.f32 %v732_v39, %v569_v62  ;;  %v753_v22 = vadd.f32 %v1824_v33, %v573_v8 }
 0x124   :  { %v1830_v20 = vpop.f32.mrf.mxu1  ;;  %v844_v3 = vpop.f32.mrf.mxu0 }
 0x125   :  { %v912_v45 = vadd.f32 %v844_v3, %v744_v51  ;;  %v754_v28 = vadd.f32 %v1830_v20, %v574_v2 }
 0x126   :  { %v1497_v55 = vpop.f32.mrf.mxu1  ;;  %v846_v57 = vpop.f32.mrf.mxu0 }
 0x127   :  { %v920_v50 = vadd.f32 %v1497_v55, %v752_v58  ;;  %v913_v61 = vadd.f32 %v846_v57, %v745_v46  ;;  %v941_v19 = vadd.f32 %v1826_v34, %v912_v45 }
 0x128   :  { %v897_v47 = vpop.f32.mrf.mxu1  ;;  %v848_v63 = vpop.f32.mrf.mxu0 }
 0x129   :  { %v914_v54 = vadd.f32 %v897_v47, %v746_v48  ;;  %v915_v49 = vadd.f32 %v848_v63, %v747_v52  ;;  %v949_v0 = vadd.f32 %v937_v35, %v920_v50  ;;  %v942_v9 = vadd.f32 %v1828_v40, %v913_v61 }
 0x12a   :  { %v1498_v1 = vpop.f32.mrf.mxu1  ;;  %v850_v56 = vpop.f32.mrf.mxu0  ;;  %v953_v31 = vmax.f32 %v941_v19, 0.0 }
 0x12b   :  { %v923_v26 = vadd.f32 %v1498_v1, %v755_v12  ;;  %v944_v10 = vadd.f32 %v1826_v34, %v915_v49  ;;  %v916_v11 = vadd.f32 %v850_v56, %v748_v13  ;;  %v943_v18 = vadd.f32 %v937_v35, %v914_v54 }
 0x12c   :  { %v900_v17 = vpop.f32.mrf.mxu1  ;;  %v854_v30 = vpop.f32.mrf.mxu0  ;;  %v961_v37 = vmax.f32 %v949_v0, 0.0  ;;  %v954_v15 = vmax.f32 %v942_v9, 0.0 }
 0x12d   :  { %v952_v27 = vadd.f32 %v937_v35, %v923_v26  ;;  %v917_v29 = vadd.f32 %v900_v17, %v749_v25  ;;  %v956_v32 = vmax.f32 %v944_v10, 0.0  ;;  %v945_v36 = vadd.f32 %v1828_v40, %v916_v11 }
 0x12e   :  { %v918_v39 = vadd.f32 %v854_v30, %v750_v16  ;;  %v856_v41 = vpop.f32.mrf.mxu0  ;;  %v955_v44 = vmax.f32 %v943_v18, 0.0 }
 0x12f   :  { %v964_v21 = vmax.f32 %v952_v27, 0.0  ;;  %v946_v38 = vadd.f32 %v937_v35, %v917_v29  ;;  %v965_v42 = vmax.f32 %v953_v31, %v956_v32  ;;  %v957_v51 = vmax.f32 %v945_v36, 0.0 }
 0x130   :  { %v919_v43 = vadd.f32 %v856_v41, %v751_v14  ;;  %v858_v3 = vpop.f32.mrf.mxu0  ;;  %v947_v35 = vadd.f32 %v1826_v34, %v918_v39 }
 0x131   :  { %v1000_v53 = vmax.f32 %v961_v37, %v964_v21  ;;  %v958_v58 = vmax.f32 %v946_v38, 0.0  ;;  %v966_v23 = vrot.slane %v965_v42, 4  ;;  %v972_v24 = vmax.f32 %v954_v15, %v957_v51 }
 0x132   :  { %v921_v55 = vadd.f32 %v858_v3, %v753_v22  ;;  %v860_v60 = vpop.f32.mrf.mxu0  ;;  %v948_v50 = vadd.f32 %v1828_v40, %v919_v43  ;;  %v959_v6 = vmax.f32 %v947_v35, 0.0 }
 0x133   :  { %v1001_v46 = vrot.slane %v1000_v53, 4  ;;  %v979_v45 = vmax.f32 %v955_v44, %v958_v58  ;;  %v967_v4 = vmax.f32 %v965_v42, %v966_v23  ;;  %v973_v48 = vrot.slane %v972_v24, 4 }
 0x134   :  { %v922_v57 = vadd.f32 %v860_v60, %v754_v28  ;;  %v950_v5 = vadd.f32 %v1826_v34, %v921_v55  ;;  %v960_v63 = vmax.f32 %v948_v50, 0.0 }
 0x135   :  { %v1002_v33 = vmax.f32 %v1000_v53, %v1001_v46  ;;  %v980_v59 = vrot.slane %v979_v45, 4  ;;  %v968_v52 = vrot.slane %v967_v4, 2  ;;  %v974_v61 = vmax.f32 %v972_v24, %v973_v48 }
 0x136   :  { %v951_v20 = vadd.f32 %v1828_v40, %v922_v57  ;;  %v962_v12 = vmax.f32 %v950_v5, 0.0  ;;  %v1383_v57 = vld [vmem:[%s1861_s4] ss:$0 sm:$0xff] }
 0x137   :  { %v1003_v47 = vrot.slane %v1002_v33, 2  ;;  %v981_v62 = vmax.f32 %v979_v45, %v980_v59  ;;  %v975_v54 = vrot.slane %v974_v61, 2  ;;  %v969_v13 = vmax.f32 %v967_v4, %v968_v52 }
 0x138   :  { %v963_v7 = vmax.f32 %v951_v20, 0.0  ;;  %v986_v1 = vmax.f32 %v959_v6, %v962_v12 }
 0x139   :  { %v1004_v19 = vmax.f32 %v1002_v33, %v1003_v47  ;;  %v982_v49 = vrot.slane %v981_v62, 2  ;;  %v976_v8 = vmax.f32 %v974_v61, %v975_v54  ;;  %v970_v2 = vrot.slane %v969_v13, 1 }
 0x13a   :  { %v993_v25 = vmax.f32 %v960_v63, %v963_v7  ;;  %v987_v34 = vrot.slane %v986_v1, 4 }
 0x13b   :  { %v1005_v0 = vrot.slane %v1004_v19, 1  ;;  %v983_v26 = vmax.f32 %v981_v62, %v982_v49  ;;  %v977_v11 = vrot.slane %v976_v8, 1  ;;  %v971_v30 = vmax.f32 %v969_v13, %v970_v2 }
 0x13c   :  { %v994_v56 = vrot.slane %v993_v25, 4  ;;  %v988_v10 = vmax.f32 %v986_v1, %v987_v34 }
 0x13d   :  { %v1006_v9 = vmax.f32 %v1004_v19, %v1005_v0  ;;  %v984_v40 = vrot.slane %v983_v26, 1  ;;  %v978_v36 = vmax.f32 %v976_v8, %v977_v11  ;;  %v1007_v41 = vpack.c.bf16 %v971_v30, %v971_v30 }
 0x13e   :  { %v995_v17 = vmax.f32 %v993_v25, %v994_v56  ;;  %v989_v27 = vrot.slane %v988_v10, 2 }
 0x13f   :  { %v1012_v16 = vpack.c.bf16 %v1006_v9, %v1006_v9  ;;  %v985_v18 = vmax.f32 %v983_v26, %v984_v40  ;;  %v1008_v22 = vpack.c.bf16 %v978_v36, %v978_v36  ;;  %v1074_v58 = vunpack.c.l.b16 %v1007_v41 }
 0x140   :  { %v996_v29 = vrot.slane %v995_v17, 2  ;;  %v990_v31 = vmax.f32 %v988_v10, %v989_v27 }
 0x141   :  { %v1009_v14 = vpack.c.bf16 %v985_v18, %v985_v18  ;;  %v1079_v37 = vunpack.c.l.b16 %v1012_v16  ;;  %v1075_v28 = vunpack.c.l.b16 %v1008_v22 }
 0x142   :  { %v997_v32 = vmax.f32 %v995_v17, %v996_v29  ;;  %v991_v38 = vrot.slane %v990_v31, 1 }
 0x143   :  { %v1076_v21 = vunpack.c.l.b16 %v1009_v14 }
 0x144   :  { %v998_v39 = vrot.slane %v997_v32, 1  ;;  %v992_v15 = vmax.f32 %v990_v31, %v991_v38 }
 0x145   :  { %v1083_v42 = vsel %vm1080_vm7, %v1079_v37, %v1076_v21 }
 0x146   :  { %v1086_v51 = vpack.c.b16 %v1083_v42, %v1083_v42  ;;  %v999_v43 = vmax.f32 %v997_v32, %v998_v39  ;;  %v1010_v44 = vpack.c.bf16 %v992_v15, %v992_v15 }
 0x148   :  { %1516 = vmatmul.mubr.bf16.vlgmr.msra.gmra.mxu1 %v1086_v51  ;;  %v1011_v53 = vpack.c.bf16 %v999_v43, %v999_v43  ;;  %v1077_v3 = vunpack.c.l.b16 %v1010_v44 }
 0x14a   :  { %v1078_v23 = vunpack.c.l.b16 %v1011_v53  ;;  %v1081_v24 = vsel %vm1080_vm7, %v1077_v3, %v1074_v58 }
 0x14b   :  { %v1084_v35 = vpack.c.b16 %v1081_v24, %v1081_v24 }
 0x14c   :  { %v1082_v46 = vsel %vm1080_vm7, %v1078_v23, %v1075_v28 }
 0x14d   :  { %v1085_v45 = vpack.c.b16 %v1082_v46, %v1082_v46 }
 0x14f   :  { %1266 = vmatprep.mubr.bf16.mxu0 %v1085_v45 }
 0x150   :  { %1267 = vmatmul.mubr.bf16.vlgmr.msra.gmra.mxu0 %v1084_v35 }
 0x208   :  { %v1308_v55 = vpop.f32.mrf.mxu1 }
 0x20a   :  { %v1517_v60 = vpop.f32.mrf.mxu1 }
 0x20c   :  { %v1311_v4 = vpop.f32.mrf.mxu1 }
 0x20e   :  { %v1518_v48 = vpop.f32.mrf.mxu1 }
 0x210   :  { %v1444_v50 = vpop.f32.mrf.mxu0 }
 0x212   :  { %v1445_v33 = vpop.f32.mrf.mxu0 }
 0x213   :  { %v1446_v59 = vadd.f32 %v1445_v33, %v1444_v50 }
 0x214   :  { %v1447_v5 = vpop.f32.mrf.mxu0 }
 0x215   :  { %v1269_v52 = vadd.f32 %v1446_v59, %v1383_v57 }
 0x216   :  { %v1448_v61 = vpop.f32.mrf.mxu0 }
 0x217   :  { %v1309_v20 = vadd.f32 %v1308_v55, %v1269_v52 }
 0x219   :  { %1314 = vst [vmem:[#allocation8] sm:$0x3] %v1309_v20 }
 0x21a   :  { %1667 = shalt.err (!%p1664_p5)
}
 0x21b   :  { %1324 = dma.vmem_to_hbm [thread:$0]  %s1322_s13, 32, %s1862_s5, [#allocation4]  }
 0x21c   :  { %1680 = dma.done.wait [#allocation4], 32  }
 0x21d   :  { %1681 = vsyncadd [#allocation4], 4294967264 }
 0x21e   :  { %1328 = vsyncpa [#allocation3], 1 }
 0x21f   :  { %1329 = vsyncpa [#allocation6], 1 }
 0x220   :  { %1330 = vsyncpa [#allocation4], 1 }

</bundles_post_ra>
